<compile_context>
chip_gen: v7x
topology: tpu7x:2x2x1
jax: 0.10.0
libtpu: 0.0.40
codegen_flags: <defaults>
</compile_context>

<pallas_src>
import jax
import jax.numpy as jnp
import numpy as np
from jax.experimental import pallas as pl
from jax.experimental.pallas import tpu as pltpu


def _pick_tile(d8: int, max_lanes: int = 2048) -> int:
    """Largest lane tile that is a multiple of 128 and divides d8, else d8."""
    if d8 <= max_lanes:
        return d8
    t = (max_lanes // 128) * 128
    while t >= 128:
        if d8 % t == 0:
            return t
        t -= 128
    return d8  # no aligned divisor: fall back to a single full-width block


def _feature_reg_kernel(labels_ref, invb_ref, f_ref, w_ref, o_ref):
    # Grid: (model m, label row l, feature tile k).
    l = pl.program_id(1)
    k = pl.program_id(2)

    # Zero the per-model accumulator (the VMEM-resident output block) once.
    @pl.when(jnp.logical_and(l == 0, k == 0))
    def _init():
        o_ref[...] = jnp.zeros_like(o_ref)

    inv_b = invb_ref[l]                       # f32 scalar; 0 where grad_b[label] == 0
    f = f_ref[0, 0].astype(jnp.float32)       # (8, TILE) features slab
    w = w_ref[0].astype(jnp.float32)          # (8, TILE) gathered grad_W row slab
    diff = f - w * inv_b                      # measured = grad_W[label] * inv_b (VPU only)
    o_ref[0] = o_ref[0] + diff * diff         # f32 accumulation, no cross-lane reduce


def feature_regularization(features, fc_weight_grad, fc_bias_grad, labels,
                           scale: float = 0.1, max_lanes: int = 2048):
    """scale * sum over models of mean((features_m - measured)^2)."""
    features = jnp.asarray(features)
    fc_weight_grad = jnp.asarray(fc_weight_grad)
    fc_bias_grad = jnp.asarray(fc_bias_grad)
    labels = jnp.asarray(labels).astype(jnp.int32)

    M, L, D = features.shape
    C, Dw = fc_weight_grad.shape
    assert D == Dw, "feature dim mismatch between features and fc weight grad"
    assert D % 8 == 0, "feature dim must be a multiple of 8"
    # TODO(synk): zero-pad D up to a multiple of 8 instead of asserting.

    D8 = D // 8
    TILE = _pick_tile(D8, max_lanes)
    KD = D8 // TILE

    # Safe, pre-masked reciprocal of the bias gradient at each label: exactly 0
    # where grad_b[label] == 0 (so measured row is exactly zero) -> the kernel
    # never divides and never sees Inf/NaN.
    b = fc_bias_grad.astype(jnp.float32)
    inv_b = jnp.where(b != 0, 1.0 / jnp.where(b != 0, b, 1.0), 0.0)
    inv_b_rows = inv_b[labels]                          # [L] f32 (tiny, lives in SMEM)

    # Row-major reshape: each row of length D becomes a lane-aligned (8, D//8)
    # slab. Same reshape on both streams -> identical element pairing.
    f3 = features.reshape(M, L, 8, D8)
    w3 = fc_weight_grad.reshape(C, 8, D8)

    cost = pl.CostEstimate(
        flops=4 * M * L * D,
        transcendentals=0,
        bytes_accessed=(M * L * D * features.dtype.itemsize            # features
                        + M * L * D * fc_weight_grad.dtype.itemsize    # gathered grad_W rows
                        + M * 8 * TILE * 4),                           # per-model partials
    )

    grid_spec = pltpu.PrefetchScalarGridSpec(
        num_scalar_prefetch=1,                 # labels -> SMEM, drives the row gather
        grid=(M, L, KD),
        in_specs=[
            # inv_b per label row: tiny f32 vector, whole array in SMEM.
            pl.BlockSpec(memory_space=pltpu.MemorySpace.SMEM),
            # features[m, l] slab (lane-aligned (8, TILE)).
            pl.BlockSpec((1, 1, 8, TILE), lambda m, l, k, lab: (m, l, 0, k)),
            # fused gather: grad_W row selected by labels[l] (no measured in HBM).
            pl.BlockSpec((1, 8, TILE), lambda m, l, k, lab: (lab[l], 0, k)),
        ],
        out_specs=pl.BlockSpec((1, 8, TILE), lambda m, l, k, lab: (m, 0, 0)),
    )

    partials = pl.pallas_call(
        _feature_reg_kernel,
        grid_spec=grid_spec,
        out_shape=jax.ShapeDtypeStruct((M, 8, TILE), jnp.float32),
        compiler_params=pltpu.CompilerParams(
            dimension_semantics=("parallel", "arbitrary", "arbitrary")),
        cost_estimate=cost,
    )(labels, inv_b_rows, f3, w3)

    # Per model: mean = (sum of squared diffs) / (L*D); then sum over models and
    # apply `scale` once (all models share the same L*D).
    return (scale / (L * D)) * jnp.sum(partials, dtype=jnp.float32)


def feature_regularization_reference(features, fc_weight_grad, fc_bias_grad,
                                     labels, scale: float = 0.1):
    """Pure-JAX reference mirroring the PyTorch module semantics."""
    b = fc_bias_grad.astype(jnp.float32)
    safe_b = jnp.where(b == 0, 1.0, b)
    debiased = fc_weight_grad.astype(jnp.float32) / safe_b[:, None]
    measured = jnp.where(b[labels, None] != 0, debiased[labels], 0.0)   # [L, D]
    diffs = features.astype(jnp.float32) - measured[None]               # [M, L, D]
    return scale * jnp.sum(jnp.mean(diffs * diffs, axis=(1, 2)))


if __name__ == "__main__":
    key = jax.random.PRNGKey(0)
    # M models, L labels (batch), feature dim D of the last Linear, C classes.
    M, L, D, C = 2, 8, 1024, 10
    k1, k2, k3 = jax.random.split(key, 3)
    features = jax.random.normal(k1, (M, L, D), dtype=jnp.float32)
    fc_weight_grad = 0.1 * jax.random.normal(k2, (C, D), dtype=jnp.float32)
    fc_bias_grad = jax.random.normal(k3, (C,), dtype=jnp.float32)
    fc_bias_grad = fc_bias_grad.at[2].set(0.0)   # exercise the zero-bias mask path
    labels = jnp.array([0, 1, 2, 3, 0, 1, 2, 3], dtype=jnp.int32)

    out = feature_regularization(features, fc_weight_grad, fc_bias_grad, labels,
                                 scale=0.1)
    out = jax.block_until_ready(out)

    ref = feature_regularization_reference(features, fc_weight_grad, fc_bias_grad,
                                           labels, scale=0.1)
    np.testing.assert_allclose(np.asarray(out), np.asarray(ref),
                               rtol=1e-4, atol=1e-6)
    print("KERNEL_OK")
</pallas_src>

<mosaic_0001>
module attributes {stable_mosaic.version = 11 : i64} {
  func.func @_feature_reg_kernel(%arg0: i32, %arg1: i32, %arg2: i32, %arg3: memref<8xi32, #tpu.memory_space<smem>>, %arg4: memref<8xf32, #tpu.memory_space<smem>>, %arg5: memref<1x1x8x128xf32, #tpu.memory_space<vmem>>, %arg6: memref<1x8x128xf32, #tpu.memory_space<vmem>>, %arg7: memref<1x8x128xf32, #tpu.memory_space<vmem>>) attributes {dimension_semantics = [#tpu.dimension_semantics<parallel>, #tpu.dimension_semantics<arbitrary>, #tpu.dimension_semantics<arbitrary>], iteration_bounds = array<i64: 2, 8, 1>, scalar_prefetch = 1 : i64, scratch_operands = 0 : i64, tpu.core_type = #tpu.core_type<tc>, window_params = [{transform_indices = @transform_0, window_bounds = array<i64: 8>}, {transform_indices = @transform_1, window_bounds = array<i64: 1, 1, 8, 128>}, {transform_indices = @transform_2, window_bounds = array<i64: 1, 8, 128>}, {transform_indices = @transform_3, window_bounds = array<i64: 1, 8, 128>}]} {
    %c0_i32 = arith.constant 0 : i32
    %0 = arith.cmpi eq, %arg1, %c0_i32 : i32
    %c0_i32_0 = arith.constant 0 : i32
    %1 = arith.cmpi eq, %arg2, %c0_i32_0 : i32
    %2 = arith.andi %0, %1 : i1
    %3 = arith.extui %2 : i1 to i32
    %c0_i32_1 = arith.constant 0 : i32
    %4 = arith.cmpi ne, %3, %c0_i32_1 : i32
    scf.if %4 {
      %cst = arith.constant 0.000000e+00 : f32
      %21 = vector.broadcast %cst : f32 to vector<1x8x128xf32>
      %c0_14 = arith.constant 0 : index
      %c0_15 = arith.constant 0 : index
      %c0_16 = arith.constant 0 : index
      %22 = vector.load %arg7[%c0_14, %c0_15, %c0_16] : memref<1x8x128xf32, #tpu.memory_space<vmem>>, vector<1x8x128xf32>
      tpu.vector_store %arg7[%c0_14, %c0_15, %c0_16], %21 {strides = array<i32>} : memref<1x8x128xf32, #tpu.memory_space<vmem>>, vector<1x8x128xf32>,
    } else {
    }
    %5 = arith.index_cast %arg1 : i32 to index
    %6 = memref.load %arg4[%5] : memref<8xf32, #tpu.memory_space<smem>>
    %c0 = arith.constant 0 : index
    %c0_2 = arith.constant 0 : index
    %c0_3 = arith.constant 0 : index
    %c0_4 = arith.constant 0 : index
    %7 = vector.load %arg5[%c0, %c0_2, %c0_3, %c0_4] : memref<1x1x8x128xf32, #tpu.memory_space<vmem>>, vector<1x1x8x128xf32>
    %8 = vector.shape_cast %7 : vector<1x1x8x128xf32> to vector<8x128xf32>
    %c0_5 = arith.constant 0 : index
    %c0_6 = arith.constant 0 : index
    %c0_7 = arith.constant 0 : index
    %9 = vector.load %arg6[%c0_5, %c0_6, %c0_7] : memref<1x8x128xf32, #tpu.memory_space<vmem>>, vector<1x8x128xf32>
    %10 = vector.shape_cast %9 : vector<1x8x128xf32> to vector<8x128xf32>
    %11 = vector.broadcast %6 : f32 to vector<8x128xf32>
    %12 = arith.mulf %10, %11 : vector<8x128xf32>
    %13 = arith.subf %8, %12 : vector<8x128xf32>
    %c0_8 = arith.constant 0 : index
    %c0_9 = arith.constant 0 : index
    %c0_10 = arith.constant 0 : index
    %14 = vector.load %arg7[%c0_8, %c0_9, %c0_10] : memref<1x8x128xf32, #tpu.memory_space<vmem>>, vector<1x8x128xf32>
    %15 = vector.shape_cast %14 : vector<1x8x128xf32> to vector<8x128xf32>
    %16 = arith.mulf %13, %13 : vector<8x128xf32>
    %17 = arith.addf %15, %16 : vector<8x128xf32>
    %c0_11 = arith.constant 0 : index
    %c0_12 = arith.constant 0 : index
    %c0_13 = arith.constant 0 : index
    %18 = vector.load %arg7[%c0_11, %c0_12, %c0_13] : memref<1x8x128xf32, #tpu.memory_space<vmem>>, vector<1x8x128xf32>
    %19 = vector.shape_cast %18 : vector<1x8x128xf32> to vector<8x128xf32>
    %20 = vector.shape_cast %17 : vector<8x128xf32> to vector<1x8x128xf32>
    tpu.vector_store %arg7[%c0_11, %c0_12, %c0_13], %20 {strides = array<i32>} : memref<1x8x128xf32, #tpu.memory_space<vmem>>, vector<1x8x128xf32>,
    return
  }
  func.func @transform_0(%arg0: i32, %arg1: i32, %arg2: i32, %arg3: memref<8xi32, #tpu.memory_space<smem>>) -> i32 {
    %c0_i32 = arith.constant 0 : i32
    %c0_i32_0 = arith.constant 0 : i32
    return %c0_i32 : i32
  }
  func.func @transform_1(%arg0: i32, %arg1: i32, %arg2: i32, %arg3: memref<8xi32, #tpu.memory_space<smem>>) -> (i32, i32, i32, i32) {
    %c0_i32 = arith.constant 0 : i32
    %c0_i32_0 = arith.constant 0 : i32
    return %arg0, %arg1, %c0_i32, %arg2 : i32, i32, i32, i32
  }
  func.func @transform_2(%arg0: i32, %arg1: i32, %arg2: i32, %arg3: memref<8xi32, #tpu.memory_space<smem>>) -> (i32, i32, i32) {
    %0 = arith.index_cast %arg1 : i32 to index
    %1 = memref.load %arg3[%0] : memref<8xi32, #tpu.memory_space<smem>>
    %c0_i32 = arith.constant 0 : i32
    %c0_i32_0 = arith.constant 0 : i32
    return %1, %c0_i32, %arg2 : i32, i32, i32
  }
  func.func @transform_3(%arg0: i32, %arg1: i32, %arg2: i32, %arg3: memref<8xi32, #tpu.memory_space<smem>>) -> (i32, i32, i32) {
    %c0_i32 = arith.constant 0 : i32
    %c0_i32_0 = arith.constant 0 : i32
    %c0_i32_1 = arith.constant 0 : i32
    return %arg0, %c0_i32, %c0_i32_0 : i32, i32, i32
  }
}

</mosaic_0001>

<bundles_post_ra>
// kernel: tpu_custom_call.1
= control target key start
LH: loop header
LB: loop body
LE: loop exit
PB: predicated region body
PF: predicated region fallthrough
CT: control target
= control target key end

     0   :  { %s1233_s0 = inlined_call_operand.hbm [shape: s32[8], index: 0, kind: input, shape index: {}]   ;;  %s1234_s1 = inlined_call_operand.vmem [shape: f32[8], index: 1, kind: input, shape index: {}]   ;;  %s1235_s2 = inlined_call_operand.hbm [shape: f32[2,8,8,128], index: 2, kind: input, shape index: {}]   ;;  %s1236_s3 = inlined_call_operand.hbm [shape: f32[10,8,128], index: 3, kind: input, shape index: {}]   ;;  %s1237_s4 = inlined_call_operand.hbm [shape: f32[2,8,128], index: 4, kind: output, shape index: {}]  }
   0x1   :  { %1258 = sst [smem:[#allocation30_spill]] %s1234_s1  ;;  %s598_s17 = scalar_lea.hbm %s1233_s0, 16 }
   0x2   :  { %1259 = sst [smem:[#allocation31_spill]] %s1237_s4  ;;  %p599_p0 = scmp.ne.s32.totalorder %s1233_s0, %s598_s17 }
   0x3   :  { %p602_p1 = scmp.lt.u32.totalorder %s598_s17, %s1233_s0 }
   0x5   :  { %p604_p2 = pnand %p602_p1, %p599_p0 }
   0x7   :  { %607 = shalt.err (!%p604_p2)  }
   0x8   :  { %s841_s22 = smov [#allocation3]  }
   0x9   :  { %10 = dma.hbm_to_smem %s1233_s0, 16, %s841_s22, [#allocation2] }
   0xa   :  { %767 = dma.done.wait [#allocation2], 16 }
   0xb   :  { %768 = vsyncadd [#allocation2], 4294967280 }
   0xc   :  { %12 = sfence }
   0xd   :  { %13 = vsyncpa [#allocation7], 0 }
   0xe   :  { %14 = vsyncpa [#allocation5], 0 }
   0xf   :  { %16 = vsyncpa [#allocation5 + $0x1], 0 }
  0x10   :  { %17 = vsyncpa [#allocation10], 0 }
  0x11   :  { %19 = vsyncpa [#allocation10 + $0x1], 0 }
  0x12   :  { %20 = vsyncpa [#allocation6], 0 }
  0x13   :  { %22 = vsyncpa [#allocation6 + $0x1], 0  ;;  %s884_s25 = smov 0   ;;  %s886_s26 = smov 0  }
  0x14   :  { %s888_s27 = smov 0   ;;  %s890_s28 = smov 0  }
  0x15   :  { %s892_s29 = smov 0   ;;  %s894_s0 = smov 0  }
  0x16   :  { %s896_s30 = smov 0   ;;  %s898_s5 = smov 0  }
  0x17   :  { %s900_s6 = smov 0   ;;  %s902_s7 = smov 0  }
  0x18   :  { %s904_s8 = smov 0   ;;  %s906_s9 = smov 0  }
  0x19   :  { %s908_s10 = smov 0   ;;  %s910_s11 = smov 0  }
  0x1a LB: > { %1260 = sst [smem:[#allocation19_spill]] %s787_s25  ;;  %s429_s12 = sadd.s32 4294967295, %s839_s11   ;;  %s839_s11 = sphi %s910_s11, %s28_s11   ;;  %s835_s10 = sphi %s908_s10, %s1318_s10   ;;  %s831_s9 = sphi %s906_s9, %s1317_s9   ;;  %s827_s8 = sphi %s904_s8, %s1316_s8   ;;  %s823_s7 = sphi %s902_s7, %s1315_s7   ;;  %s819_s6 = sphi %s900_s6, %s1314_s6   ;;  %s815_s5 = sphi %s898_s5, %s1313_s5   ;;  %s811_s30 = sphi %s896_s30, %s1303_s30   ;;  %s807_s0 = sphi %s894_s0, %s1312_s0   ;;  %s803_s29 = sphi %s892_s29, %s1311_s29   ;;  %s799_s28 = sphi %s890_s28, %s1310_s28   ;;  %s795_s27 = sphi %s888_s27, %s1309_s27   ;;  %s791_s26 = sphi %s886_s26, %s1308_s26   ;;  %s787_s25 = sphi %s884_s25, %s1307_s25  }
  0x1b   : > { %1261 = sst [smem:[#allocation20_spill]] %s791_s26  ;;  %s430_s13 = sadd.s32 4294967294, %s839_s11  }
  0x1c   : > { %1262 = sst [smem:[#allocation21_spill]] %s815_s5  ;;  %p954_p3 = scmp.eq.s32.totalorder %s429_s12, 0 }
  0x1d   : > { %1263 = sst [smem:[#allocation22_spill]] %s823_s7  ;;  %p122_p4 = scmp.ne.s32.totalorder %s803_s29, %s799_s28 }
  0x1e   : > { %1264 = sst [smem:[#allocation23_spill]] %s827_s8  ;;  %p145_p5 = scmp.ne.s32.totalorder %s795_s27, %s791_s26 }
  0x1f   : > { %s1265_s14 = scalar_select %p954_p3, 1, 0 }
  0x20   : > { %p146_p6 = scmp.eq.s32.totalorder %s429_s12, 15  ;;  %p963_p7 = por %p122_p4, %p954_p3 }
  0x21   : > { %p151_p8 = scmp.ne.s32.totalorder %s791_s26, %s787_s25  ;;  %p152_p10 = scmp.eq.s32.totalorder %s430_s13, 15 }
  0x22   : > { %s1266_s15 = scalar_select %p963_p7, 1, 0 }
  0x23   : > { %p969_p9 = por %p146_p6, %p145_p5  ;;  %p431_p11 = scmp.ge.s32.totalorder %s839_s11, 1 }
  0x24   : > { %1267 = sst [smem:[#allocation24_spill]] %s1266_s15  ;;  %p159_p12 = scmp.lt.s32.totalorder %s839_s11, 17 }
  0x25   : > { %s1268_s16 = scalar_select %p969_p9, 1, 0 }
  0x26   : > { %p975_p13 = por %p152_p10, %p151_p8  ;;  %p979_p0 = pnand %p431_p11, %p159_p12 }
  0x27   : > { %1269 = sst [smem:[#allocation25_spill]] %s1268_s16  ;;  %s1273_s1 = sld [smem:[#allocation30_spill]] }
  0x28   : > { %s1270_s17 = scalar_select %p975_p13, 1, 0 }
  0x29   : > { %p462_p1 = pneg %p979_p0 }
  0x2a   : > { %1271 = sst [smem:[#allocation26_spill]] %s1270_s17 }
  0x2b   : > { %p463_p2 = pnand %p462_p1, %p954_p3 }
  0x2d   : > { %s172_s21 = sshll.u32 %s1273_s1, 4  ;;  %p610_p5 = pneg %p463_p2  ;;  %s173_s21 = int_to_ptr.vmem [resolvable:$true] %s172_s21 }
  0x2e   : > { %s608_s22 = scalar_lea.vmem %s173_s21, 16  ;;  %p616_p10 = scmp.lt.s32.totalorder %s173_s21, %s173_s21 }
  0x2f   : > { %p609_p4 = scmp.ne.s32.totalorder %s173_s21, %s608_s22  ;;  %p617_p11 = scmp.lt.s32.totalorder %s608_s22, %s608_s22 }
  0x31   : > { %p611_p6 = pnand %p610_p5, %p609_p4  ;;  %p618_p12 = por %p617_p11, %p616_p10 }
  0x33   : > { %p612_p8 = pneg %p611_p6 }
  0x35   : > { %p619_p13 = pnand %p618_p12, %p612_p8 }
  0x37   : > { %622 = shalt.err (!%p619_p13)
}
  0x38   : > { %s842_s23 = smov [#allocation4]   ;;  %s43_s24 = sadd.s32 1, %s831_s9 }
  0x39   : > { %465 = dma.vmem_to_smem (!%p463_p2), %s173_s21, 16, %s842_s23, [#allocation7]  }
  0x3a   : > { %s47_s28 = sadd.s32 1, %s835_s10  ;;  %p45_p13 = scmp.ge.s32.totalorder %s43_s24, 8 }
  0x3b   : > { %s79_s12 = sadd.s32 1, %s819_s6  ;;  %p86_p1 = scmp.ne.s32.totalorder %s819_s6, %s815_s5 }
  0x3c   : > { %p1252_p4 = scmp.eq.s32.totalorder %s839_s11, 0  ;;  %s1320_s24 = smov (%p45_p13, %s43_s24), 0 }
  0x3d   : > { %1274 = sst [smem:[#allocation27_spill]] %s1320_s24  ;;  %s1322_s28 = smov (!%p45_p13, %s47_s28), %s835_s10 }
  0x3e   : > { %s73_s13 = ssub.s32 %s831_s9, %s1320_s24  ;;  %p1003_p2 = por %p1252_p4, %p86_p1 }
  0x3f   : > { %p49_p5 = scmp.ge.s32.totalorder %s1322_s28, 2  ;;  %p92_p6 = scmp.ne.s32.totalorder %s815_s5, %s811_s30 }
  0x40   : > { %s1010_s20 = sld [smem:[#allocation3 + %s831_s9]]  ;;  %s135_s23 = sadd.s32 1, %s795_s27 }
  0x41   : > { %s1013_s21 = sld [smem:[#allocation3 + %s1320_s24]]  ;;  %s1324_s28 = smov (%p49_p5, %s1322_s28), 0 }
  0x42   : > { %1276 = sst [smem:[#allocation28_spill]] %s1324_s28  ;;  %p1019_p8 = por %p954_p3, %p92_p6 }
  0x43   : > { %s72_s1 = ssub.s32 %s835_s10, %s1324_s28  ;;  %p1251_p10 = scmp.lt.s32.totalorder %s839_s11, 16 }
  0x44   : > { %s1277_s22 = scalar_select %p1019_p8, 1, 0 }
  0x45   : > { %s74_s30 = sor.u32 %s73_s13, %s72_s1  ;;  %p133_p11 = scmp.eq.s32.totalorder %s72_s1, 0 }
  0x46   : > { %1278 = sst [smem:[#allocation29_spill]] %s1277_s22  ;;  %p77_p12 = scmp.eq.s32.totalorder %s74_s30, 0 }
  0x47   : > { %s183_s24 = sand.u32 1, %s819_s6   ;;  %s435_s16 = sshll.u32 %s835_s10, 3 }
  0x48   : > { %s1029_s17 = scalar_select %p133_p11, %s795_s27, %s135_s23  }
  0x49   : > { %s1032_s25 = scalar_select %p77_p12, %s819_s6, %s79_s12  }
  0x4a   : > { %s434_s4 = sshll.u32 %s183_s24, 3  ;;  %s193_s8 = sadd.s32 %s831_s9, %s435_s16 }
  0x4b   : > { %s187_s7 = scalar_lea.vmem [#allocation8], %s434_s4  ;;  %s436_s15 = sshll.u32 %s193_s8, 7 }
  0x4c   : > { %s197_s26 = sshll.u32 %s187_s7, 4  ;;  %s1041_s5 = scalar_lea.hbm %s1235_s2, %s436_s15  ;;  %s1036_s26 = int_to_ptr.vmem [resolvable:$true] %s197_s26 }
  0x4d   : > { %p1047_p13 = pnand %p1251_p10, %p1003_p2  ;;  %s104_s4 = ssub.s32 %s1010_s20, %s1013_s21 }
  0x4e   : > { %s184_s7 = scalar_lea.sflag [#allocation5], %s183_s24  ;;  %s623_s8 = scalar_lea.hbm %s1041_s5, 128 }
  0x4f   : > { %p624_p1 = scmp.ne.s32.totalorder %s1041_s5, %s623_s8  ;;  %p625_p5 = pneg %p1047_p13 }
  0x50   : > { %s628_s28 = scalar_lea.hbm %s1235_s2, 2048  ;;  %p629_p2 = scmp.lt.u32.totalorder %s1041_s5, %s1235_s2 }
  0x51   : > { %p626_p6 = pnand %p625_p5, %p624_p1  ;;  %p630_p12 = scmp.lt.u32.totalorder %s628_s28, %s623_s8 }
  0x52   : > { %p632_p4 = scmp.lt.u32.totalorder %s623_s8, %s1041_s5 }
  0x53   : > { %p627_p11 = pneg %p626_p6  ;;  %p631_p10 = por %p630_p12, %p629_p2 }
  0x55   : > { %p633_p9 = por %p632_p4, %p631_p10 }
  0x57   : > { %p634_p7 = pnand %p633_p9, %p627_p11 }
  0x59   : > { %637 = shalt.err (!%p634_p7)
}
  0x5a   : > { %s638_s24 = scalar_lea.vmem %s1036_s26, 128  ;;  %s843_s19 = smov [#allocation8]  }
  0x5b   : > { %p639_p1 = scmp.ne.s32.totalorder %s1036_s26, %s638_s24  ;;  %s643_s22 = sshll.u32 %s843_s19, 4  ;;  %s644_s22 = int_to_ptr.vmem [resolvable:$false] %s643_s22 }
  0x5c   : > { %s645_s23 = scalar_lea.vmem %s644_s22, 256  ;;  %p646_p3 = scmp.lt.s32.totalorder %s1036_s26, %s644_s22 }
  0x5d   : > { %p641_p6 = pnand %p639_p1, %p625_p5  ;;  %p647_p2 = scmp.lt.s32.totalorder %s645_s23, %s638_s24 }
  0x5f   : > { %p642_p8 = pneg %p641_p6  ;;  %p648_p12 = por %p647_p2, %p646_p3 }
  0x61   : > { %p649_p4 = pnand %p648_p12, %p642_p8 }
  0x63   : > { %652 = shalt.err (!%p649_p4)
}
  0x64   : > { %469 = dma.hbm_to_vmem [thread:$0]  (!%p1047_p13), %s1041_s5, 128, %s1036_s26, %s184_s7  }
  0x65   : > { %p107_p3 = scmp.eq.s32.totalorder %s104_s4, 0  ;;  %s109_s30 = sadd.s32 1, %s807_s0 }
  0x66   : > { %p116_p7 = scmp.ne.s32.totalorder %s807_s0, %s803_s29  ;;  %s204_s1 = sand.u32 1, %s807_s0  }
  0x67   : > { %s1086_s8 = scalar_select %p107_p3, %s807_s0, %s109_s30  }
  0x68   : > { %p1280_p9 = scmp.eq.s32.totalorder %s839_s11, 0  ;;  %s437_s15 = sshll.u32 %s204_s1, 3 }
  0x69   : > { %p1281_p10 = scmp.lt.s32.totalorder %s839_s11, 16  ;;  %s208_s5 = scalar_lea.vmem [#allocation9], %s437_s15 }
  0x6a   : > { %p118_p8 = por %p116_p7, %p1280_p9  ;;  %s217_s20 = sshll.u32 %s208_s5, 4  ;;  %s1101_s20 = int_to_ptr.vmem [resolvable:$true] %s217_s20 }
  0x6b   : > { %p1283_p13 = pmov %p1281_p10  ;;  %p1284_p11 = pmov %p1281_p10 }
  0x6c   : > { %p1092_p5 = pnand %p1281_p10, %p118_p8  ;;  %s205_s24 = scalar_lea.sflag [#allocation10], %s204_s1 }
  0x6d   : > { %s453_s28 = scalar_select %p118_p8, [#allocation3], [#allocation12] }
  0x6e   : > { %s454_s12 = scalar_select %p118_p8, %s831_s9, 0 }
  0x6f   : > { %s1326_s28 = smov (!%p1283_p13, %s453_s28), [#allocation13]  ;;  %p655_p6 = pneg %p1092_p5 }
  0x70   : > { %s1328_s12 = smov (!%p1284_p11, %s454_s12), 0  ;;  %s658_s30 = scalar_lea.hbm %s1236_s3, 1280 }
  0x71   : > { %s209_s26 = sld [smem:[%s1326_s28 + %s1328_s12]] }
  0x77   : > { %s438_s21 = sshll.u32 %s209_s26, 7 }
  0x78   : > { %s1106_s13 = scalar_lea.hbm %s1236_s3, %s438_s21 }
  0x79   : > { %s653_s19 = scalar_lea.hbm %s1106_s13, 128  ;;  %p659_p4 = scmp.lt.u32.totalorder %s1106_s13, %s1236_s3 }
  0x7a   : > { %p654_p1 = scmp.ne.s32.totalorder %s1106_s13, %s653_s19  ;;  %p660_p3 = scmp.lt.u32.totalorder %s658_s30, %s653_s19 }
  0x7b   : > { %p662_p9 = scmp.lt.u32.totalorder %s653_s19, %s1106_s13 }
  0x7c   : > { %p656_p2 = pnand %p655_p6, %p654_p1  ;;  %p661_p7 = por %p660_p3, %p659_p4 }
  0x7e   : > { %p657_p12 = pneg %p656_p2  ;;  %p663_p8 = por %p662_p9, %p661_p7 }
  0x80   : > { %p664_p10 = pnand %p663_p8, %p657_p12 }
  0x82   : > { %667 = shalt.err (!%p664_p10)
}
  0x83   : > { %s668_s1 = scalar_lea.vmem %s1101_s20, 128  ;;  %s844_s12 = smov [#allocation9]  }
  0x84   : > { %p669_p13 = scmp.ne.s32.totalorder %s1101_s20, %s668_s1  ;;  %s673_s26 = sshll.u32 %s844_s12, 4  ;;  %s674_s26 = int_to_ptr.vmem [resolvable:$false] %s673_s26 }
  0x85   : > { %s675_s5 = scalar_lea.vmem %s674_s26, 256  ;;  %p676_p2 = scmp.lt.s32.totalorder %s1101_s20, %s674_s26 }
  0x86   : > { %p671_p11 = pnand %p669_p13, %p655_p6  ;;  %p677_p4 = scmp.lt.s32.totalorder %s675_s5, %s668_s1 }
  0x88   : > { %p672_p1 = pneg %p671_p11  ;;  %p678_p3 = por %p677_p4, %p676_p2 }
  0x8a   : > { %p679_p7 = pnand %p678_p3, %p672_p1 }
  0x8c   : > { %682 = shalt.err (!%p679_p7)
}
  0x8d   : > { %474 = dma.hbm_to_vmem [thread:$0]  (!%p1092_p5), %s1106_s13, 128, %s1101_s20, %s205_s24  }
  0x8e   : > { %226 = sbr.rel (%p979_p0) target bundleno = 221 (0xdd), region = 32  ;;  %p1285_p6 = scmp.ne.s32.totalorder (!%p979_p0), %s1265_s14, 0 }
  0x95   : > { %770 = dma.done.wait (%p1285_p6), [#allocation7], 16  }
  0x96   : > { %772 = vsyncadd (%p1285_p6), [#allocation7], 4294967280  ;;  %s1286_s21 = sld [smem:[#allocation21_spill]]  ;;  %s1287_s4 = sld [smem:[#allocation29_spill]] }
  0x9c   : > { %s232_s7 = sand.u32 1, %s1286_s21   ;;  %p1288_p12 = scmp.ne.s32.totalorder %s1287_s4, 0 }
  0x9d   : > { %s441_s19 = sshll.u32 %s232_s7, 3  ;;  %s233_s22 = scalar_lea.sflag [#allocation5], %s232_s7 }
  0x9e   : > { %s236_s23 = scalar_lea.vmem [#allocation8], %s441_s19 }
  0x9f   : > { %774 = dma.done.wait (%p1288_p12), %s233_s22, 128  }
  0xa0   : > { %776 = vsyncadd (%p1288_p12), %s233_s22, 4294967168  ;;  %s1289_s18 = sld [smem:[#allocation24_spill]]  ;;  %s241_s16 = sand.u32 1, %s803_s29  }
  0xa1   : > { %s442_s20 = sshll.u32 %s241_s16, 3  ;;  %s242_s13 = scalar_lea.sflag [#allocation10], %s241_s16 }
  0xa2   : > { %s245_s24 = scalar_lea.vmem [#allocation9], %s442_s20 }
  0xa6   : > { %p1290_p0 = scmp.ne.s32.totalorder %s1289_s18, 0 }
  0xa8   : > { %778 = dma.done.wait (%p1290_p0), %s242_s13, 128  }
  0xa9   : > { %780 = vsyncadd (%p1290_p0), %s242_s13, 4294967168 }
  0xaa   : > { %250 = sfence }
  0xab   : > { %s1291_s14 = sld [smem:[#allocation20_spill]]  ;;  %s1292_s30 = sld [smem:[#allocation22_spill]] }
  0xb1   : > { %s271_s15 = sand.u32 1, %s1291_s14   ;;  %p275_p5 = scmp.eq.s32.totalorder %s1292_s30, 0 }
  0xb2   : > { %s443_s28 = sshll.u32 %s271_s15, 3  ;;  %v845_v0 = vmov (%p275_p5), 0.0  }
  0xb3   : > { %s273_s1 = scalar_lea.vmem [#allocation11], %s443_s28  ;;  %280 = sbr.rel (!%p275_p5) target bundleno = 186 (0xba), region = 48 }
  0xb4   : > { %281 = vst [vmem:[%s273_s1] sm:$0xff] (%p275_p5), %v845_v0 }
  0xba PF: > { %s1293_s12 = sld [smem:[#allocation22_spill]]  ;;  %s1294_s26 = sld [smem:[#allocation23_spill]]  ;;  %v284_v1 = vld [vmem:[%s245_s24] sm:$0xff]  ;;  %v283_v2 = vld [vmem:[%s236_s23] sm:$0xff] }
  0xbb   : > { %s1295_s21 = sld [smem:[#allocation25_spill]]  ;;  %v288_v6 = vld [vmem:[%s273_s1] sm:$0xff]  ;;  %s306_s7 = sshll.u32 %s273_s1, 4  ;;  %s1158_s7 = int_to_ptr.vmem [resolvable:$true] %s306_s7 }
  0xbc   : > { %s1296_s18 = sld [smem:[#allocation31_spill]]  ;;  %s293_s23 = scalar_lea.sflag [#allocation6], %s271_s15 }
  0xbd   : > { %s683_s20 = scalar_lea.vmem %s1158_s7, 128  ;;  %s846_s13 = smov [#allocation11]  }
  0xbe   : > { %p684_p9 = scmp.ne.s32.totalorder %s1158_s7, %s683_s20  ;;  %s687_s24 = sshll.u32 %s846_s13, 4  ;;  %s688_s24 = int_to_ptr.vmem [resolvable:$false] %s687_s24 }
  0xbf   : > { %s689_s14 = scalar_lea.vmem %s688_s24, 256  ;;  %p690_p11 = scmp.lt.s32.totalorder %s1158_s7, %s688_s24 }
  0xc0   : > { %s282_s5 = sld [smem:[#allocation4 + %s1293_s12]]  ;;  %s446_s4 = sshll.u32 %s1294_s26, 7 }
  0xc1   : > { %p1297_p8 = scmp.ne.s32.totalorder %s1295_s21, 0  ;;  %p691_p1 = scmp.lt.s32.totalorder %s689_s14, %s683_s20 }
  0xc2   : > { %s1156_s16 = scalar_lea.hbm %s1296_s18, %s446_s4 }
  0xc3   : > { %p685_p10 = pnand %p684_p9, %p1297_p8  ;;  %p692_p2 = por %p691_p1, %p690_p11 }
  0xc5   : > { %p686_p13 = pneg %p685_p10 }
  0xc6   : > { %v285_v3 = vstv %s282_s5 }
  0xc7   : > { %v286_v4 = vmul.f32 %v285_v3, %v284_v1  ;;  %p693_p4 = pnand %p692_p2, %p686_p13 }
  0xc9   : > { %v287_v5 = vsub.f32 %v283_v2, %v286_v4 }
  0xcb   : > { %v289_v7 = vmul.f32 %v287_v5, %v287_v5 }
  0xcd   : > { %v290_v8 = vadd.f32 %v289_v7, %v288_v6 }
  0xcf   : > { %291 = vst [vmem:[%s273_s1] sm:$0xff] %v290_v8 }
  0xd0   : > { %696 = shalt.err (!%p693_p4)
}
  0xd1   : > { %s697_s30 = scalar_lea.hbm %s1156_s16, 128  ;;  %s701_s1 = scalar_lea.hbm %s1296_s18, 256 }
  0xd2   : > { %p698_p3 = scmp.ne.s32.totalorder %s1156_s16, %s697_s30  ;;  %p702_p12 = scmp.lt.u32.totalorder %s1156_s16, %s1296_s18 }
  0xd3   : > { %p703_p0 = scmp.lt.u32.totalorder %s701_s1, %s697_s30  ;;  %p705_p9 = scmp.lt.u32.totalorder %s697_s30, %s1156_s16 }
  0xd4   : > { %p699_p7 = pnand %p698_p3, %p1297_p8 }
  0xd5   : > { %p704_p5 = por %p703_p0, %p702_p12 }
  0xd6   : > { %p700_p6 = pneg %p699_p7 }
  0xd7   : > { %p706_p10 = por %p705_p9, %p704_p5 }
  0xd9   : > { %p707_p13 = pnand %p706_p10, %p700_p6 }
  0xdb   : > { %710 = shalt.err (!%p707_p13)
}
  0xdc   : > { %460 = dma.vmem_to_hbm [thread:$0]  (%p1297_p8), %s1158_s7, 128, %s1156_s16, %s293_s23  }
  0xdd PF: > { %s1298_s5 = sld [smem:[#allocation19_spill]]  ;;  %s1299_s4 = sld [smem:[#allocation26_spill]] }
  0xde   : > { %p482_p11 = scmp.ge.s32.totalorder %s839_s11, 2 }
  0xe3   : > { %s318_s19 = sand.u32 1, %s1298_s5   ;;  %p1300_p1 = scmp.ne.s32.totalorder %s1299_s4, 0 }
  0xe4   : > { %s319_s22 = scalar_lea.sflag [#allocation6], %s318_s19 }
  0xe5   : > { %p476_p2 = pnand %p482_p11, %p1300_p1 }
  0xe7   : > { %782 = dma.done.wait (!%p476_p2), %s319_s22, 128  }
  0xe8   : > { %784 = vsyncadd (!%p476_p2), %s319_s22, 4294967168  ;;  %s28_s11 = sadd.s32 1, %s839_s11   ;;  %s1302_s21 = sld [smem:[#allocation20_spill]] }
  0xe9   : > { %p1186_p4 = scmp.ge.s32.totalorder %s28_s11, 18   ;;  %s1303_s30 = sld [smem:[#allocation21_spill]] }
  0xea   : > { %s1304_s7 = smov %s1032_s25  ;;  %s1305_s16 = sld [smem:[#allocation27_spill]] }
  0xeb   : > { %s1306_s23 = sld [smem:[#allocation28_spill]]  ;;  %s1308_s26 = smov %s795_s27 }
  0xec   : > { %s1309_s27 = smov %s1029_s17  ;;  %s1310_s28 = smov %s803_s29 }
  0xed   : > { %s1311_s29 = smov %s807_s0  ;;  %s1312_s0 = smov %s1086_s8 }
  0xee   : > { %s1307_s25 = smov %s1302_s21  ;;  %s1313_s5 = smov %s819_s6 }
  0xef   : > { %s1314_s6 = smov %s1304_s7  ;;  %s1315_s7 = smov %s831_s9 }
  0xf0   : > { %s1316_s8 = smov %s835_s10  ;;  %s1317_s9 = smov %s1305_s16 }
  0xf1   : > { %s1318_s10 = smov %s1306_s23  ;;  %27 = sbr.rel (!%p1186_p4) target bundleno = 26 (0x1a), region = 99 }
  0xf8   :  { %324 = vsyncpa [#allocation5], 1 }
  0xf9   :  { %326 = vsyncpa [#allocation5 + $0x1], 1 }
  0xfa   :  { %327 = vsyncpa [#allocation10], 1 }
  0xfb   :  { %329 = vsyncpa [#allocation10 + $0x1], 1 }
  0xfc   :  { %330 = vsyncpa [#allocation6], 1 }
  0xfd   :  { %332 = vsyncpa [#allocation6 + $0x1], 1 }
  0xfe   :  { %333 = vsyncpa [#allocation7], 1 }
  0xff   :  { %335 = vsyncpa [#allocation7 + $0x1], 1 }

</bundles_post_ra>
